<compile_context>
chip_gen: v7x
topology: tpu7x:2x2x1
jax: 0.10.0
libtpu: 0.0.40
codegen_flags: <defaults>
</compile_context>

<pallas_src>
import functools

import jax
import jax.numpy as jnp
from jax.experimental import pallas as pl
from jax.experimental.pallas import tpu as pltpu

LANES = 128            # lane dim of a vreg (last dim of the 2-D slab)
MAX_TILE_ROWS = 2048   # 2048 * 128 * 4 B = 1 MiB per f32 operand tile


def _round_up(x, m):
    return ((x + m - 1) // m) * m


def _gaussian_noise_kernel(f_ref, z_ref, u_ref, o_ref, *, p, mu, sigma):
    # Compute in f32 in-vreg, store back in the input's dtype.
    f = f_ref[...].astype(jnp.float32)
    noise = mu + sigma * z_ref[...]
    mask = (u_ref[...] > (1.0 - p)).astype(jnp.float32)
    o_ref[...] = (f + noise * mask).astype(o_ref.dtype)


def gaussian_noise_2_features(f, key, *, p, mu=0.0, sigma=0.01):
    """f + N(mu, sigma) * Bernoulli(p) mask, elementwise, any input shape."""
    orig_shape = f.shape
    orig_dtype = f.dtype
    n = f.size

    rows = pl.cdiv(n, LANES)
    tile_rows = min(MAX_TILE_ROWS, _round_up(rows, 8))
    padded_rows = _round_up(rows, tile_rows)
    n_pad = padded_rows * LANES

    flat = f.reshape(-1)
    if n_pad != n:
        flat = jnp.pad(flat, (0, n_pad - n))
    f2d = flat.reshape(padded_rows, LANES)

    # TODO(synk): torch's global-RNG normal/rand are drawn via jax.random (XLA
    # RNG) outside the kernel because the TPU hardware PRNG primitives
    # (pltpu.prng_*) have no interpret/CPU lowering in this environment.
    kz, ku = jax.random.split(key)
    z = jax.random.normal(kz, (padded_rows, LANES), dtype=jnp.float32)
    u = jax.random.uniform(ku, (padded_rows, LANES), dtype=jnp.float32)

    grid = (padded_rows // tile_rows,)

    def blk():
        return pl.BlockSpec((tile_rows, LANES), lambda i: (i, 0))

    kernel = functools.partial(
        _gaussian_noise_kernel, p=float(p), mu=float(mu), sigma=float(sigma))

    out2d = pl.pallas_call(
        kernel,
        out_shape=jax.ShapeDtypeStruct((padded_rows, LANES), orig_dtype),
        grid=grid,
        in_specs=[blk(), blk(), blk()],
        out_specs=blk(),
        compiler_params=pltpu.CompilerParams(
            dimension_semantics=("parallel",)),
    )(f2d, z, u)

    out_flat = out2d.reshape(-1)
    if n_pad != n:
        out_flat = out_flat[:n]
    return out_flat.reshape(orig_shape)


if __name__ == "__main__":
    key = jax.random.PRNGKey(0)
    kdata, knoise = jax.random.split(key)

    # NCHW features, small shapes: batch=2, channels=4, spatial=16x16.
    f = jax.random.normal(kdata, (2, 4, 16, 16), dtype=jnp.float32)

    out = gaussian_noise_2_features(f, knoise, p=0.5, mu=0.0, sigma=0.01)
    out = jax.block_until_ready(out)

    # Sanity checks on semantics.
    assert out.shape == f.shape and out.dtype == f.dtype
    assert bool(jnp.all(jnp.isfinite(out)))
    diff = out - f
    # Perturbation bounded by a few sigma (sigma = 0.01).
    assert bool(jnp.max(jnp.abs(diff)) < 0.1)
    # Roughly a fraction p of elements changed (masked noise is ~never exactly 0).
    frac_changed = float(jnp.mean((jnp.abs(diff) > 0).astype(jnp.float32)))
    assert 0.3 < frac_changed < 0.7

    print("KERNEL_OK")
</pallas_src>

<mosaic_0001>
module attributes {stable_mosaic.version = 11 : i64} {
  func.func @_gaussian_noise_kernel(%arg0: i32, %arg1: memref<16x128xf32, #tpu.memory_space<vmem>>, %arg2: memref<16x128xf32, #tpu.memory_space<vmem>>, %arg3: memref<16x128xf32, #tpu.memory_space<vmem>>, %arg4: memref<16x128xf32, #tpu.memory_space<vmem>>) attributes {dimension_semantics = [#tpu.dimension_semantics<parallel>], iteration_bounds = array<i64: 1>, scalar_prefetch = 0 : i64, scratch_operands = 0 : i64, tpu.core_type = #tpu.core_type<tc>, window_params = [{transform_indices = @transform_0, window_bounds = array<i64: 16, 128>}, {transform_indices = @transform_1, window_bounds = array<i64: 16, 128>}, {transform_indices = @transform_2, window_bounds = array<i64: 16, 128>}, {transform_indices = @transform_3, window_bounds = array<i64: 16, 128>}]} {
    %c0 = arith.constant 0 : index
    %c0_0 = arith.constant 0 : index
    %0 = vector.load %arg1[%c0, %c0_0] : memref<16x128xf32, #tpu.memory_space<vmem>>, vector<16x128xf32>
    %c0_1 = arith.constant 0 : index
    %c0_2 = arith.constant 0 : index
    %1 = vector.load %arg2[%c0_1, %c0_2] : memref<16x128xf32, #tpu.memory_space<vmem>>, vector<16x128xf32>
    %cst = arith.constant 0.00999999977 : f32
    %2 = vector.broadcast %cst : f32 to vector<16x128xf32>
    %3 = arith.mulf %2, %1 : vector<16x128xf32>
    %cst_3 = arith.constant 0.000000e+00 : f32
    %4 = vector.broadcast %cst_3 : f32 to vector<16x128xf32>
    %5 = arith.addf %4, %3 : vector<16x128xf32>
    %c0_4 = arith.constant 0 : index
    %c0_5 = arith.constant 0 : index
    %6 = vector.load %arg3[%c0_4, %c0_5] : memref<16x128xf32, #tpu.memory_space<vmem>>, vector<16x128xf32>
    %cst_6 = arith.constant 5.000000e-01 : f32
    %7 = vector.broadcast %cst_6 : f32 to vector<16x128xf32>
    %8 = arith.cmpf ogt, %6, %7 : vector<16x128xf32>
    %9 = arith.extui %8 : vector<16x128xi1> to vector<16x128xi32>
    %10 = arith.sitofp %9 : vector<16x128xi32> to vector<16x128xf32>
    %11 = arith.mulf %5, %10 : vector<16x128xf32>
    %12 = arith.addf %0, %11 : vector<16x128xf32>
    %c0_7 = arith.constant 0 : index
    %c0_8 = arith.constant 0 : index
    %13 = vector.load %arg4[%c0_7, %c0_8] : memref<16x128xf32, #tpu.memory_space<vmem>>, vector<16x128xf32>
    tpu.vector_store %arg4[%c0_7, %c0_8], %12 {strides = array<i32>} : memref<16x128xf32, #tpu.memory_space<vmem>>, vector<16x128xf32>,
    return
  }
  func.func @transform_0(%arg0: i32) -> (i32, i32) {
    %c0_i32 = arith.constant 0 : i32
    %c0_i32_0 = arith.constant 0 : i32
    return %arg0, %c0_i32 : i32, i32
  }
  func.func @transform_1(%arg0: i32) -> (i32, i32) {
    %c0_i32 = arith.constant 0 : i32
    %c0_i32_0 = arith.constant 0 : i32
    return %arg0, %c0_i32 : i32, i32
  }
  func.func @transform_2(%arg0: i32) -> (i32, i32) {
    %c0_i32 = arith.constant 0 : i32
    %c0_i32_0 = arith.constant 0 : i32
    return %arg0, %c0_i32 : i32, i32
  }
  func.func @transform_3(%arg0: i32) -> (i32, i32) {
    %c0_i32 = arith.constant 0 : i32
    %c0_i32_0 = arith.constant 0 : i32
    return %arg0, %c0_i32 : i32, i32
  }
}

</mosaic_0001>

<bundles_post_ra>
// kernel: tpu_custom_call.1
= control target key start
LH: loop header
LB: loop body
LE: loop exit
PB: predicated region body
PF: predicated region fallthrough
CT: control target
= control target key end

     0   :  { %8 = vsyncpa [#allocation3], 0  ;;  %s293_s0 = inlined_call_operand.hbm [shape: f32[16,128], index: 0, kind: input, shape index: {}]   ;;  %s294_s1 = inlined_call_operand.hbm [shape: f32[16,128], index: 1, kind: input, shape index: {}]   ;;  %s295_s2 = inlined_call_operand.hbm [shape: f32[16,128], index: 2, kind: input, shape index: {}]   ;;  %s296_s3 = inlined_call_operand.hbm [shape: f32[16,128], index: 3, kind: output, shape index: {}]  }
   0x1   :  { %9 = vsyncpa [#allocation6], 0 }
   0x2   :  { %10 = vsyncpa [#allocation4], 0  ;;  %s199_s12 = smov [#allocation5]   ;;  %s200_s14 = smov [#allocation2]  }
   0x3   :  { %s28_s13 = sshll.u32 %s199_s12, 4  ;;  %s16_s15 = sshll.u32 %s200_s14, 4  ;;  %s29_s13 = int_to_ptr.vmem [resolvable:$true] %s28_s13  ;;  %s226_s15 = int_to_ptr.vmem [resolvable:$true] %s16_s15 }
   0x4   :  { %s105_s18 = scalar_lea.hbm %s294_s1, 256 }
   0x5   :  { %p106_p0 = scmp.ne.s32.totalorder %s294_s1, %s105_s18  ;;  %p109_p1 = scmp.lt.u32.totalorder %s105_s18, %s294_s1 }
   0x7   :  { %p111_p2 = pnand %p109_p1, %p106_p0 }
   0x9   :  { %114 = shalt.err (!%p111_p2)
}
   0xa   :  { %s115_s23 = scalar_lea.vmem %s29_s13, 256  ;;  %p120_p4 = scmp.lt.s32.totalorder %s29_s13, %s29_s13 }
   0xb   :  { %p116_p3 = scmp.ne.s32.totalorder %s29_s13, %s115_s23  ;;  %p121_p5 = scmp.lt.s32.totalorder %s115_s23, %s115_s23 }
   0xd   :  { %p122_p6 = por %p121_p5, %p120_p4 }
   0xf   :  { %p123_p7 = pnand %p122_p6, %p116_p3 }
  0x11   :  { %126 = shalt.err (!%p123_p7)
}
  0x12   :  { %s201_s24 = smov 128   ;;  %s202_s25 = smov 8  }
  0x13   :  { %34 = dma.hbm_to_vmem [thread:$0]  %s294_s1, 256, %s29_s13, [#allocation6], %s201_s24, %s201_s24, %s202_s25  }
  0x14   :  { %s127_s30 = scalar_lea.hbm %s293_s0, 256 }
  0x15   :  { %p128_p8 = scmp.ne.s32.totalorder %s293_s0, %s127_s30  ;;  %p131_p9 = scmp.lt.u32.totalorder %s127_s30, %s293_s0 }
  0x17   :  { %p133_p10 = pnand %p131_p9, %p128_p8 }
  0x19   :  { %136 = shalt.err (!%p133_p10)
}
  0x1a   :  { %s137_s8 = scalar_lea.vmem %s226_s15, 256  ;;  %p142_p12 = scmp.lt.s32.totalorder %s226_s15, %s226_s15 }
  0x1b   :  { %p138_p11 = scmp.ne.s32.totalorder %s226_s15, %s137_s8  ;;  %p143_p13 = scmp.lt.s32.totalorder %s137_s8, %s137_s8 }
  0x1d   :  { %p144_p0 = por %p143_p13, %p142_p12 }
  0x1f   :  { %p145_p1 = pnand %p144_p0, %p138_p11 }
  0x21   :  { %148 = shalt.err (!%p145_p1)
}
  0x22   :  { %22 = dma.hbm_to_vmem [thread:$0]  %s293_s0, 256, %s226_s15, [#allocation3], %s201_s24, %s201_s24, %s202_s25  }
  0x23   :  { %s203_s10 = smov [#allocation7]   ;;  %s149_s14 = scalar_lea.hbm %s295_s2, 256 }
  0x24   :  { %s40_s11 = sshll.u32 %s203_s10, 4  ;;  %p150_p2 = scmp.ne.s32.totalorder %s295_s2, %s149_s14  ;;  %s41_s11 = int_to_ptr.vmem [resolvable:$true] %s40_s11 }
  0x25   :  { %p153_p3 = scmp.lt.u32.totalorder %s149_s14, %s295_s2 }
  0x27   :  { %p155_p4 = pnand %p153_p3, %p150_p2 }
  0x29   :  { %158 = shalt.err (!%p155_p4)
}
  0x2a   :  { %s159_s20 = scalar_lea.vmem %s41_s11, 256  ;;  %p164_p6 = scmp.lt.s32.totalorder %s41_s11, %s41_s11 }
  0x2b   :  { %p160_p5 = scmp.ne.s32.totalorder %s41_s11, %s159_s20  ;;  %p165_p7 = scmp.lt.s32.totalorder %s159_s20, %s159_s20 }
  0x2d   :  { %p166_p8 = por %p165_p7, %p164_p6 }
  0x2f   :  { %p167_p9 = pnand %p166_p8, %p160_p5 }
  0x31   :  { %170 = shalt.err (!%p167_p9)
}
  0x32   :  { %46 = dma.hbm_to_vmem [thread:$0]  %s295_s2, 256, %s41_s11, [#allocation6], %s201_s24, %s201_s24, %s202_s25  }
  0x33   :  { %193 = dma.done.wait [#allocation3], 256  }
  0x34   :  { %194 = vsyncadd [#allocation3], 4294967040 }
  0x35   :  { %195 = dma.done.wait [#allocation6], 512  }
  0x36   :  { %196 = vsyncadd [#allocation6], 4294966784  ;;  %v58_v0 = vld [vmem:[#allocation5] sm:$0xff]  ;;  %v64_v1 = vld [vmem:[#allocation7] sm:$0xff]  ;;  %v204_v6 = vmov 0.0   ;;  %s205_s21 = smov [#allocation8]  }
  0x37   :  { %v60_v2 = vmul.f32 0.01, %v58_v0  ;;  %vm66_vm0 = vcmp.gt.f32.partialorder %v64_v1, 0.5  ;;  %v59_v3 = vld [vmem:[#allocation5 + $0x8] sm:$0xff]  ;;  %v65_v4 = vld [vmem:[#allocation7 + $0x8] sm:$0xff]  ;;  %v56_v5 = vld [vmem:[#allocation2] sm:$0xff] }
  0x38   :  { %v96_v7 = vsel %vm66_vm0, 1.0, %v204_v6  ;;  %v61_v8 = vmul.f32 0.01, %v59_v3  ;;  %vm67_vm1 = vcmp.gt.f32.partialorder %v65_v4, 0.5  ;;  %v57_v10 = vld [vmem:[#allocation2 + $0x8] sm:$0xff]  ;;  %s83_s2 = sshll.u32 %s205_s21, 4  ;;  %s84_s2 = int_to_ptr.vmem [resolvable:$true] %s83_s2 }
  0x39   :  { %v72_v9 = vmul.f32 %v96_v7, %v60_v2  ;;  %v97_v11 = vsel %vm67_vm1, 1.0, %v204_v6  ;;  %s171_s22 = scalar_lea.vmem %s84_s2, 256  ;;  %p176_p11 = scmp.lt.s32.totalorder %s84_s2, %s84_s2 }
  0x3a   :  { %v73_v12 = vmul.f32 %v97_v11, %v61_v8  ;;  %p172_p10 = scmp.ne.s32.totalorder %s84_s2, %s171_s22  ;;  %p177_p12 = scmp.lt.s32.totalorder %s171_s22, %s171_s22 }
  0x3b   :  { %v74_v13 = vadd.f32 %v72_v9, %v56_v5 }
  0x3c   :  { %v75_v14 = vadd.f32 %v73_v12, %v57_v10  ;;  %p178_p13 = por %p177_p12, %p176_p11 }
  0x3d   :  { %76 = vst [vmem:[#allocation8] sm:$0xff] %v74_v13 }
  0x3e   :  { %77 = vst [vmem:[#allocation8 + $0x8] sm:$0xff] %v75_v14  ;;  %p179_p0 = pnand %p178_p13, %p172_p10 }
  0x40   :  { %182 = shalt.err (!%p179_p0)
}
  0x41   :  { %s183_s27 = scalar_lea.hbm %s296_s3, 256 }
  0x42   :  { %p184_p1 = scmp.ne.s32.totalorder %s296_s3, %s183_s27  ;;  %p187_p2 = scmp.lt.u32.totalorder %s183_s27, %s296_s3 }
  0x44   :  { %p189_p3 = pnand %p187_p2, %p184_p1 }
  0x46   :  { %192 = shalt.err (!%p189_p3)
}
  0x47   :  { %89 = dma.vmem_to_hbm [thread:$0]  %s84_s2, 256, %s296_s3, [#allocation4], %s201_s24, %s201_s24, %s202_s25  }
  0x48   :  { %197 = dma.done.wait [#allocation4], 256  }
  0x49   :  { %198 = vsyncadd [#allocation4], 4294967040 }
  0x4a   :  { %93 = vsyncpa [#allocation3], 1 }
  0x4b   :  { %94 = vsyncpa [#allocation6], 1 }
  0x4c   :  { %95 = vsyncpa [#allocation4], 1 }

</bundles_post_ra>
